<compile_context>
chip_gen: v7x
topology: tpu7x:2x2x1
jax: 0.10.0
libtpu: 0.0.40
codegen_flags: <defaults>
</compile_context>

<pallas_src>
import jax
import jax.numpy as jnp
from jax import lax
from jax.experimental import pallas as pl
from jax.experimental.pallas import tpu as pltpu


# ---------------------------------------------------------------------------
# Fused kernel: latent_initial + time_modeling + decoder
# ---------------------------------------------------------------------------
def _base_dynamics_kernel(x_ref, eps_ref, we_ref, be_ref, wm_ref, bm_ref,
                          wv_ref, bv_ref, wt_ref, bt_ref, wd_ref, bd_ref,
                          xout_ref, mu_ref, lv_ref):
    NV, C = mu_ref.shape
    T = xout_ref.shape[1]

    # ---- latent_initial: encoder + mu_0 / var_0 + clamp + reparameterization
    # TODO(synk): InitialEncoder is a graph-conv encoder in the original repo
    # (source not provided); approximated as a per-node linear + ReLU.
    x = x_ref[...]                                               # (NV, D)
    h = jnp.maximum(
        jnp.dot(x, we_ref[...], preferred_element_type=jnp.float32)
        + be_ref[...], 0.0)                                      # (NV, C)
    mu = jnp.dot(h, wm_ref[...], preferred_element_type=jnp.float32) + bm_ref[...]
    lv = jnp.dot(h, wv_ref[...], preferred_element_type=jnp.float32) + bv_ref[...]
    mu = jnp.clip(mu, -100.0, 85.0)                              # torch.clamp
    lv = jnp.clip(lv, -100.0, 85.0)
    z0 = mu + eps_ref[...] * jnp.exp(0.5 * lv)                   # reparameterize
    mu_ref[...] = mu
    lv_ref[...] = lv

    # ---- time_modeling + decoder (T folded into an in-kernel fori_loop) ----
    wt = wt_ref[...]                                             # (C, C)
    bt = bt_ref[...]                                             # (1, C)
    wd = wd_ref[...]                                             # (1, C)
    b_dec = bd_ref[0]                                            # SMEM scalar
    col_ids = lax.broadcasted_iota(jnp.int32, (NV, T), 1)

    def decode(z):
        # TODO(synk): Decoder is a graph-conv decoder in the original repo;
        # approximated as a per-node linear readout latent_dim -> 1.
        return jnp.sum(z * wd, axis=-1, keepdims=True) + b_dec   # (NV, 1)

    # frame 0 decodes z_0 directly (matches PyTorch time_modeling)
    acc0 = jnp.where(col_ids == 0, decode(z0),
                     jnp.zeros((NV, T), jnp.float32))

    def step(t, carry):
        z, acc = carry
        # TODO(synk): Transition_NoDomain source unavailable; modeled as a
        # linear latent transition z_t = tanh(z_{t-1} W + b).
        z = jnp.tanh(
            jnp.dot(z, wt, preferred_element_type=jnp.float32) + bt)
        acc = jnp.where(col_ids == t, decode(z), acc)
        return z, acc

    _, acc = lax.fori_loop(1, T, step, (z0, acc0), unroll=True)

    # single store of the full (NV, T) slab, time on the lane axis
    xout_ref[...] = acc


# ---------------------------------------------------------------------------
# Wrapper (slicing / reshapes + pallas_call plumbing)
# ---------------------------------------------------------------------------
def base_dynamics_forward(x, y, params, eps_key):
    """Mirrors BaseDynamics.forward(x, y, heart_name).

    Returns ((x_,), (None, None, None, None, mu_0, logvar_0)).
    """
    del y  # unused in the PyTorch forward as well
    N, V, T = x.shape
    D = params["init_dim"]
    C = params["latent_dim"]
    NV = N * V

    x_init = x[:, :, :D].reshape(NV, D)                          # x[:, :, :init_dim]
    eps = jax.random.normal(eps_key, (NV, C), dtype=jnp.float32)

    vmem = pl.BlockSpec(memory_space=pltpu.MemorySpace.VMEM)
    smem = pl.BlockSpec(memory_space=pltpu.MemorySpace.SMEM)

    call = pl.pallas_call(
        _base_dynamics_kernel,
        in_specs=[vmem, vmem,        # x_init, eps
                  vmem, vmem,        # W_enc, b_enc
                  vmem, vmem,        # W_mu,  b_mu
                  vmem, vmem,        # W_var, b_var
                  vmem, vmem,        # W_trans, b_trans
                  vmem, smem],       # w_dec, b_dec (scalar in SMEM)
        out_specs=[vmem, vmem, vmem],
        out_shape=[
            jax.ShapeDtypeStruct((NV, T), jnp.float32),          # decoded signal
            jax.ShapeDtypeStruct((NV, C), jnp.float32),          # mu_0
            jax.ShapeDtypeStruct((NV, C), jnp.float32),          # logvar_0
        ],
    )
    x_out, mu0, lv0 = call(
        x_init, eps,
        params["W_enc"], params["b_enc"],
        params["W_mu"], params["b_mu"],
        params["W_var"], params["b_var"],
        params["W_trans"], params["b_trans"],
        params["w_dec"], params["b_dec"])

    x_rec = x_out.reshape(N, V, T)                               # time last, no transpose
    mu0 = mu0.reshape(N, V, C)
    logvar0 = lv0.reshape(N, V, C)
    return (x_rec,), (None, None, None, None, mu0, logvar0)


# ---------------------------------------------------------------------------
# Deterministic parameter construction (shapes implied by __init__)
# ---------------------------------------------------------------------------
def init_params(key, num_channel, latent_dim, init_dim):
    del num_channel  # only used inside the (approximated) graph encoder/decoder
    ks = jax.random.split(key, 8)
    f32 = jnp.float32

    def lin(k, fan_in, fan_out):
        s = 1.0 / jnp.sqrt(float(fan_in))
        return s * jax.random.normal(k, (fan_in, fan_out), f32)

    return {
        "init_dim": init_dim,
        "latent_dim": latent_dim,
        "W_enc": lin(ks[0], init_dim, latent_dim),
        "b_enc": 0.01 * jax.random.normal(ks[1], (1, latent_dim), f32),
        "W_mu": lin(ks[2], latent_dim, latent_dim),
        "b_mu": 0.01 * jax.random.normal(ks[3], (1, latent_dim), f32),
        "W_var": lin(ks[4], latent_dim, latent_dim),
        "b_var": 0.01 * jax.random.normal(ks[5], (1, latent_dim), f32),
        "W_trans": lin(ks[6], latent_dim, latent_dim),
        "b_trans": jnp.zeros((1, latent_dim), f32),
        "w_dec": lin(ks[7], latent_dim, 1).T,                    # (1, C)
        "b_dec": jnp.zeros((1,), f32),                           # scalar (SMEM)
    }


if __name__ == "__main__":
    key = jax.random.PRNGKey(0)
    k_x, k_y, k_p, k_eps = jax.random.split(key, 4)

    # small shapes consistent with forward(x: (N, V, T))
    N, V, T = 2, 16, 8
    num_channel, latent_dim, init_dim = 4, 32, 4

    x = jax.random.normal(k_x, (N, V, T), jnp.float32)
    y = jax.random.normal(k_y, (N, V, T), jnp.float32)           # unused (as in PyTorch)
    params = init_params(k_p, num_channel, latent_dim, init_dim)

    (x_rec,), (_, _, _, _, mu0, logvar0) = base_dynamics_forward(x, y, params, k_eps)
    jax.block_until_ready((x_rec, mu0, logvar0))

    assert x_rec.shape == (N, V, T)
    assert mu0.shape == (N, V, latent_dim)
    assert logvar0.shape == (N, V, latent_dim)
    assert bool(jnp.all(jnp.isfinite(x_rec)))
    print("KERNEL_OK")
</pallas_src>

<mosaic_0001>
module attributes {stable_mosaic.version = 11 : i64} {
  func.func @_base_dynamics_kernel(%arg0: memref<32x4xf32, #tpu.memory_space<vmem>>, %arg1: memref<32x32xf32, #tpu.memory_space<vmem>>, %arg2: memref<4x32xf32, #tpu.memory_space<vmem>>, %arg3: memref<1x32xf32, #tpu.memory_space<vmem>>, %arg4: memref<32x32xf32, #tpu.memory_space<vmem>>, %arg5: memref<1x32xf32, #tpu.memory_space<vmem>>, %arg6: memref<32x32xf32, #tpu.memory_space<vmem>>, %arg7: memref<1x32xf32, #tpu.memory_space<vmem>>, %arg8: memref<32x32xf32, #tpu.memory_space<vmem>>, %arg9: memref<1x32xf32, #tpu.memory_space<vmem>>, %arg10: memref<1x32xf32, #tpu.memory_space<vmem>>, %arg11: memref<1xf32, #tpu.memory_space<smem>>, %arg12: memref<32x8xf32, #tpu.memory_space<vmem>>, %arg13: memref<32x32xf32, #tpu.memory_space<vmem>>, %arg14: memref<32x32xf32, #tpu.memory_space<vmem>>) attributes {dimension_semantics = [], scalar_prefetch = 0 : i64, scratch_operands = 0 : i64, tpu.core_type = #tpu.core_type<tc>} {
    %c0 = arith.constant 0 : index
    %c0_0 = arith.constant 0 : index
    %0 = vector.load %arg0[%c0, %c0_0] : memref<32x4xf32, #tpu.memory_space<vmem>>, vector<32x4xf32>
    %c0_1 = arith.constant 0 : index
    %c0_2 = arith.constant 0 : index
    %1 = vector.load %arg2[%c0_1, %c0_2] : memref<4x32xf32, #tpu.memory_space<vmem>>, vector<4x32xf32>
    %cst = arith.constant dense<0.000000e+00> : vector<32x32xf32>
    %2 = tpu.matmul %0, %1, %cst {dimension_numbers = #tpu.dot_dimension_numbers<[1], [0], [0], [1], [0, 0, 1, 1], [], []>} : vector<32x4xf32>, vector<4x32xf32>, vector<32x32xf32> -> vector<32x32xf32>
    %c0_3 = arith.constant 0 : index
    %c0_4 = arith.constant 0 : index
    %3 = vector.load %arg3[%c0_3, %c0_4] : memref<1x32xf32, #tpu.memory_space<vmem>>, vector<1x32xf32>
    %4 = vector.broadcast %3 : vector<1x32xf32> to vector<32x32xf32>
    %5 = arith.addf %2, %4 : vector<32x32xf32>
    %cst_5 = arith.constant 0.000000e+00 : f32
    %6 = vector.broadcast %cst_5 : f32 to vector<32x32xf32>
    %7 = arith.maximumf %5, %6 : vector<32x32xf32>
    %c0_6 = arith.constant 0 : index
    %c0_7 = arith.constant 0 : index
    %8 = vector.load %arg4[%c0_6, %c0_7] : memref<32x32xf32, #tpu.memory_space<vmem>>, vector<32x32xf32>
    %cst_8 = arith.constant dense<0.000000e+00> : vector<32x32xf32>
    %9 = tpu.matmul %7, %8, %cst_8 {dimension_numbers = #tpu.dot_dimension_numbers<[1], [0], [0], [1], [0, 0, 1, 1], [], []>} : vector<32x32xf32>, vector<32x32xf32>, vector<32x32xf32> -> vector<32x32xf32>
    %c0_9 = arith.constant 0 : index
    %c0_10 = arith.constant 0 : index
    %10 = vector.load %arg5[%c0_9, %c0_10] : memref<1x32xf32, #tpu.memory_space<vmem>>, vector<1x32xf32>
    %11 = vector.broadcast %10 : vector<1x32xf32> to vector<32x32xf32>
    %12 = arith.addf %9, %11 : vector<32x32xf32>
    %c0_11 = arith.constant 0 : index
    %c0_12 = arith.constant 0 : index
    %13 = vector.load %arg6[%c0_11, %c0_12] : memref<32x32xf32, #tpu.memory_space<vmem>>, vector<32x32xf32>
    %cst_13 = arith.constant dense<0.000000e+00> : vector<32x32xf32>
    %14 = tpu.matmul %7, %13, %cst_13 {dimension_numbers = #tpu.dot_dimension_numbers<[1], [0], [0], [1], [0, 0, 1, 1], [], []>} : vector<32x32xf32>, vector<32x32xf32>, vector<32x32xf32> -> vector<32x32xf32>
    %c0_14 = arith.constant 0 : index
    %c0_15 = arith.constant 0 : index
    %15 = vector.load %arg7[%c0_14, %c0_15] : memref<1x32xf32, #tpu.memory_space<vmem>>, vector<1x32xf32>
    %16 = vector.broadcast %15 : vector<1x32xf32> to vector<32x32xf32>
    %17 = arith.addf %14, %16 : vector<32x32xf32>
    %cst_16 = arith.constant -1.000000e+02 : f32
    %cst_17 = arith.constant 8.500000e+01 : f32
    %18 = vector.broadcast %cst_16 : f32 to vector<32x32xf32>
    %19 = arith.maximumf %18, %12 : vector<32x32xf32>
    %20 = vector.broadcast %cst_17 : f32 to vector<32x32xf32>
    %21 = arith.minimumf %20, %19 : vector<32x32xf32>
    %cst_18 = arith.constant -1.000000e+02 : f32
    %cst_19 = arith.constant 8.500000e+01 : f32
    %22 = vector.broadcast %cst_18 : f32 to vector<32x32xf32>
    %23 = arith.maximumf %22, %17 : vector<32x32xf32>
    %24 = vector.broadcast %cst_19 : f32 to vector<32x32xf32>
    %25 = arith.minimumf %24, %23 : vector<32x32xf32>
    %c0_20 = arith.constant 0 : index
    %c0_21 = arith.constant 0 : index
    %26 = vector.load %arg1[%c0_20, %c0_21] : memref<32x32xf32, #tpu.memory_space<vmem>>, vector<32x32xf32>
    %cst_22 = arith.constant 5.000000e-01 : f32
    %27 = vector.broadcast %cst_22 : f32 to vector<32x32xf32>
    %28 = arith.mulf %27, %25 : vector<32x32xf32>
    %29 = math.exp %28 : vector<32x32xf32>
    %30 = arith.mulf %26, %29 : vector<32x32xf32>
    %31 = arith.addf %21, %30 : vector<32x32xf32>
    %c0_23 = arith.constant 0 : index
    %c0_24 = arith.constant 0 : index
    %32 = vector.load %arg13[%c0_23, %c0_24] : memref<32x32xf32, #tpu.memory_space<vmem>>, vector<32x32xf32>
    tpu.vector_store %arg13[%c0_23, %c0_24], %21 {strides = array<i32>} : memref<32x32xf32, #tpu.memory_space<vmem>>, vector<32x32xf32>,
    %c0_25 = arith.constant 0 : index
    %c0_26 = arith.constant 0 : index
    %33 = vector.load %arg14[%c0_25, %c0_26] : memref<32x32xf32, #tpu.memory_space<vmem>>, vector<32x32xf32>
    tpu.vector_store %arg14[%c0_25, %c0_26], %25 {strides = array<i32>} : memref<32x32xf32, #tpu.memory_space<vmem>>, vector<32x32xf32>,
    %c0_27 = arith.constant 0 : index
    %c0_28 = arith.constant 0 : index
    %34 = vector.load %arg8[%c0_27, %c0_28] : memref<32x32xf32, #tpu.memory_space<vmem>>, vector<32x32xf32>
    %c0_29 = arith.constant 0 : index
    %c0_30 = arith.constant 0 : index
    %35 = vector.load %arg9[%c0_29, %c0_30] : memref<1x32xf32, #tpu.memory_space<vmem>>, vector<1x32xf32>
    %c0_31 = arith.constant 0 : index
    %c0_32 = arith.constant 0 : index
    %36 = vector.load %arg10[%c0_31, %c0_32] : memref<1x32xf32, #tpu.memory_space<vmem>>, vector<1x32xf32>
    %c0_33 = arith.constant 0 : index
    %37 = memref.load %arg11[%c0_33] : memref<1xf32, #tpu.memory_space<smem>>
    %38 = tpu.iota {dimensions = array<i32: 1>} : vector<32x8xi32>
    %c0_i32 = arith.constant 0 : i32
    %39 = vector.broadcast %c0_i32 : i32 to vector<32x8xi32>
    %40 = arith.cmpi eq, %38, %39 : vector<32x8xi32>
    %41 = vector.broadcast %36 : vector<1x32xf32> to vector<32x32xf32>
    %42 = arith.mulf %31, %41 : vector<32x32xf32>
    %cst_34 = arith.constant dense<0.000000e+00> : vector<32xf32>
    %43 = vector.multi_reduction <add>, %42, %cst_34 [1] : vector<32x32xf32> to vector<32xf32>
    %44 = vector.shape_cast %43 : vector<32xf32> to vector<32x1xf32>
    %45 = vector.broadcast %37 : f32 to vector<32x1xf32>
    %46 = arith.addf %44, %45 : vector<32x1xf32>
    %cst_35 = arith.constant 0.000000e+00 : f32
    %47 = vector.broadcast %cst_35 : f32 to vector<32x8xf32>
    %48 = vector.shape_cast %46 : vector<32x1xf32> to vector<32x1xf32>
    %49 = vector.broadcast %48 : vector<32x1xf32> to vector<32x8xf32>
    %50 = arith.select %40, %49, %47 : vector<32x8xi1>, vector<32x8xf32>
    %c1_i32 = arith.constant 1 : i32
    %cst_36 = arith.constant dense<0.000000e+00> : vector<32x32xf32>
    %51 = tpu.matmul %31, %34, %cst_36 {dimension_numbers = #tpu.dot_dimension_numbers<[1], [0], [0], [1], [0, 0, 1, 1], [], []>} : vector<32x32xf32>, vector<32x32xf32>, vector<32x32xf32> -> vector<32x32xf32>
    %52 = vector.broadcast %35 : vector<1x32xf32> to vector<32x32xf32>
    %53 = arith.addf %51, %52 : vector<32x32xf32>
    %54 = math.tanh %53 : vector<32x32xf32>
    %55 = vector.broadcast %c1_i32 : i32 to vector<32x8xi32>
    %56 = arith.cmpi eq, %38, %55 : vector<32x8xi32>
    %57 = vector.broadcast %36 : vector<1x32xf32> to vector<32x32xf32>
    %58 = arith.mulf %54, %57 : vector<32x32xf32>
    %cst_37 = arith.constant dense<0.000000e+00> : vector<32xf32>
    %59 = vector.multi_reduction <add>, %58, %cst_37 [1] : vector<32x32xf32> to vector<32xf32>
    %60 = vector.shape_cast %59 : vector<32xf32> to vector<32x1xf32>
    %61 = vector.broadcast %37 : f32 to vector<32x1xf32>
    %62 = arith.addf %60, %61 : vector<32x1xf32>
    %63 = vector.shape_cast %62 : vector<32x1xf32> to vector<32x1xf32>
    %64 = vector.broadcast %63 : vector<32x1xf32> to vector<32x8xf32>
    %65 = arith.select %56, %64, %50 : vector<32x8xi1>, vector<32x8xf32>
    %c2_i32 = arith.constant 2 : i32
    %cst_38 = arith.constant dense<0.000000e+00> : vector<32x32xf32>
    %66 = tpu.matmul %54, %34, %cst_38 {dimension_numbers = #tpu.dot_dimension_numbers<[1], [0], [0], [1], [0, 0, 1, 1], [], []>} : vector<32x32xf32>, vector<32x32xf32>, vector<32x32xf32> -> vector<32x32xf32>
    %67 = vector.broadcast %35 : vector<1x32xf32> to vector<32x32xf32>
    %68 = arith.addf %66, %67 : vector<32x32xf32>
    %69 = math.tanh %68 : vector<32x32xf32>
    %70 = vector.broadcast %c2_i32 : i32 to vector<32x8xi32>
    %71 = arith.cmpi eq, %38, %70 : vector<32x8xi32>
    %72 = vector.broadcast %36 : vector<1x32xf32> to vector<32x32xf32>
    %73 = arith.mulf %69, %72 : vector<32x32xf32>
    %cst_39 = arith.constant dense<0.000000e+00> : vector<32xf32>
    %74 = vector.multi_reduction <add>, %73, %cst_39 [1] : vector<32x32xf32> to vector<32xf32>
    %75 = vector.shape_cast %74 : vector<32xf32> to vector<32x1xf32>
    %76 = vector.broadcast %37 : f32 to vector<32x1xf32>
    %77 = arith.addf %75, %76 : vector<32x1xf32>
    %78 = vector.shape_cast %77 : vector<32x1xf32> to vector<32x1xf32>
    %79 = vector.broadcast %78 : vector<32x1xf32> to vector<32x8xf32>
    %80 = arith.select %71, %79, %65 : vector<32x8xi1>, vector<32x8xf32>
    %c3_i32 = arith.constant 3 : i32
    %cst_40 = arith.constant dense<0.000000e+00> : vector<32x32xf32>
    %81 = tpu.matmul %69, %34, %cst_40 {dimension_numbers = #tpu.dot_dimension_numbers<[1], [0], [0], [1], [0, 0, 1, 1], [], []>} : vector<32x32xf32>, vector<32x32xf32>, vector<32x32xf32> -> vector<32x32xf32>
    %82 = vector.broadcast %35 : vector<1x32xf32> to vector<32x32xf32>
    %83 = arith.addf %81, %82 : vector<32x32xf32>
    %84 = math.tanh %83 : vector<32x32xf32>
    %85 = vector.broadcast %c3_i32 : i32 to vector<32x8xi32>
    %86 = arith.cmpi eq, %38, %85 : vector<32x8xi32>
    %87 = vector.broadcast %36 : vector<1x32xf32> to vector<32x32xf32>
    %88 = arith.mulf %84, %87 : vector<32x32xf32>
    %cst_41 = arith.constant dense<0.000000e+00> : vector<32xf32>
    %89 = vector.multi_reduction <add>, %88, %cst_41 [1] : vector<32x32xf32> to vector<32xf32>
    %90 = vector.shape_cast %89 : vector<32xf32> to vector<32x1xf32>
    %91 = vector.broadcast %37 : f32 to vector<32x1xf32>
    %92 = arith.addf %90, %91 : vector<32x1xf32>
    %93 = vector.shape_cast %92 : vector<32x1xf32> to vector<32x1xf32>
    %94 = vector.broadcast %93 : vector<32x1xf32> to vector<32x8xf32>
    %95 = arith.select %86, %94, %80 : vector<32x8xi1>, vector<32x8xf32>
    %c4_i32 = arith.constant 4 : i32
    %cst_42 = arith.constant dense<0.000000e+00> : vector<32x32xf32>
    %96 = tpu.matmul %84, %34, %cst_42 {dimension_numbers = #tpu.dot_dimension_numbers<[1], [0], [0], [1], [0, 0, 1, 1], [], []>} : vector<32x32xf32>, vector<32x32xf32>, vector<32x32xf32> -> vector<32x32xf32>
    %97 = vector.broadcast %35 : vector<1x32xf32> to vector<32x32xf32>
    %98 = arith.addf %96, %97 : vector<32x32xf32>
    %99 = math.tanh %98 : vector<32x32xf32>
    %100 = vector.broadcast %c4_i32 : i32 to vector<32x8xi32>
    %101 = arith.cmpi eq, %38, %100 : vector<32x8xi32>
    %102 = vector.broadcast %36 : vector<1x32xf32> to vector<32x32xf32>
    %103 = arith.mulf %99, %102 : vector<32x32xf32>
    %cst_43 = arith.constant dense<0.000000e+00> : vector<32xf32>
    %104 = vector.multi_reduction <add>, %103, %cst_43 [1] : vector<32x32xf32> to vector<32xf32>
    %105 = vector.shape_cast %104 : vector<32xf32> to vector<32x1xf32>
    %106 = vector.broadcast %37 : f32 to vector<32x1xf32>
    %107 = arith.addf %105, %106 : vector<32x1xf32>
    %108 = vector.shape_cast %107 : vector<32x1xf32> to vector<32x1xf32>
    %109 = vector.broadcast %108 : vector<32x1xf32> to vector<32x8xf32>
    %110 = arith.select %101, %109, %95 : vector<32x8xi1>, vector<32x8xf32>
    %c5_i32 = arith.constant 5 : i32
    %cst_44 = arith.constant dense<0.000000e+00> : vector<32x32xf32>
    %111 = tpu.matmul %99, %34, %cst_44 {dimension_numbers = #tpu.dot_dimension_numbers<[1], [0], [0], [1], [0, 0, 1, 1], [], []>} : vector<32x32xf32>, vector<32x32xf32>, vector<32x32xf32> -> vector<32x32xf32>
    %112 = vector.broadcast %35 : vector<1x32xf32> to vector<32x32xf32>
    %113 = arith.addf %111, %112 : vector<32x32xf32>
    %114 = math.tanh %113 : vector<32x32xf32>
    %115 = vector.broadcast %c5_i32 : i32 to vector<32x8xi32>
    %116 = arith.cmpi eq, %38, %115 : vector<32x8xi32>
    %117 = vector.broadcast %36 : vector<1x32xf32> to vector<32x32xf32>
    %118 = arith.mulf %114, %117 : vector<32x32xf32>
    %cst_45 = arith.constant dense<0.000000e+00> : vector<32xf32>
    %119 = vector.multi_reduction <add>, %118, %cst_45 [1] : vector<32x32xf32> to vector<32xf32>
    %120 = vector.shape_cast %119 : vector<32xf32> to vector<32x1xf32>
    %121 = vector.broadcast %37 : f32 to vector<32x1xf32>
    %122 = arith.addf %120, %121 : vector<32x1xf32>
    %123 = vector.shape_cast %122 : vector<32x1xf32> to vector<32x1xf32>
    %124 = vector.broadcast %123 : vector<32x1xf32> to vector<32x8xf32>
    %125 = arith.select %116, %124, %110 : vector<32x8xi1>, vector<32x8xf32>
    %c6_i32 = arith.constant 6 : i32
    %cst_46 = arith.constant dense<0.000000e+00> : vector<32x32xf32>
    %126 = tpu.matmul %114, %34, %cst_46 {dimension_numbers = #tpu.dot_dimension_numbers<[1], [0], [0], [1], [0, 0, 1, 1], [], []>} : vector<32x32xf32>, vector<32x32xf32>, vector<32x32xf32> -> vector<32x32xf32>
    %127 = vector.broadcast %35 : vector<1x32xf32> to vector<32x32xf32>
    %128 = arith.addf %126, %127 : vector<32x32xf32>
    %129 = math.tanh %128 : vector<32x32xf32>
    %130 = vector.broadcast %c6_i32 : i32 to vector<32x8xi32>
    %131 = arith.cmpi eq, %38, %130 : vector<32x8xi32>
    %132 = vector.broadcast %36 : vector<1x32xf32> to vector<32x32xf32>
    %133 = arith.mulf %129, %132 : vector<32x32xf32>
    %cst_47 = arith.constant dense<0.000000e+00> : vector<32xf32>
    %134 = vector.multi_reduction <add>, %133, %cst_47 [1] : vector<32x32xf32> to vector<32xf32>
    %135 = vector.shape_cast %134 : vector<32xf32> to vector<32x1xf32>
    %136 = vector.broadcast %37 : f32 to vector<32x1xf32>
    %137 = arith.addf %135, %136 : vector<32x1xf32>
    %138 = vector.shape_cast %137 : vector<32x1xf32> to vector<32x1xf32>
    %139 = vector.broadcast %138 : vector<32x1xf32> to vector<32x8xf32>
    %140 = arith.select %131, %139, %125 : vector<32x8xi1>, vector<32x8xf32>
    %c7_i32 = arith.constant 7 : i32
    %cst_48 = arith.constant dense<0.000000e+00> : vector<32x32xf32>
    %141 = tpu.matmul %129, %34, %cst_48 {dimension_numbers = #tpu.dot_dimension_numbers<[1], [0], [0], [1], [0, 0, 1, 1], [], []>} : vector<32x32xf32>, vector<32x32xf32>, vector<32x32xf32> -> vector<32x32xf32>
    %142 = vector.broadcast %35 : vector<1x32xf32> to vector<32x32xf32>
    %143 = arith.addf %141, %142 : vector<32x32xf32>
    %144 = math.tanh %143 : vector<32x32xf32>
    %145 = vector.broadcast %c7_i32 : i32 to vector<32x8xi32>
    %146 = arith.cmpi eq, %38, %145 : vector<32x8xi32>
    %147 = vector.broadcast %36 : vector<1x32xf32> to vector<32x32xf32>
    %148 = arith.mulf %144, %147 : vector<32x32xf32>
    %cst_49 = arith.constant dense<0.000000e+00> : vector<32xf32>
    %149 = vector.multi_reduction <add>, %148, %cst_49 [1] : vector<32x32xf32> to vector<32xf32>
    %150 = vector.shape_cast %149 : vector<32xf32> to vector<32x1xf32>
    %151 = vector.broadcast %37 : f32 to vector<32x1xf32>
    %152 = arith.addf %150, %151 : vector<32x1xf32>
    %153 = vector.shape_cast %152 : vector<32x1xf32> to vector<32x1xf32>
    %154 = vector.broadcast %153 : vector<32x1xf32> to vector<32x8xf32>
    %155 = arith.select %146, %154, %140 : vector<32x8xi1>, vector<32x8xf32>
    %c7_i32_50 = arith.constant 7 : i32
    %c0_51 = arith.constant 0 : index
    %c0_52 = arith.constant 0 : index
    %156 = vector.load %arg12[%c0_51, %c0_52] : memref<32x8xf32, #tpu.memory_space<vmem>>, vector<32x8xf32>
    tpu.vector_store %arg12[%c0_51, %c0_52], %155 {strides = array<i32>} : memref<32x8xf32, #tpu.memory_space<vmem>>, vector<32x8xf32>,
    return
  }
}

</mosaic_0001>

<bundles_post_ra>
// kernel: tpu_custom_call.1
= control target key start
LH: loop header
LB: loop body
LE: loop exit
PB: predicated region body
PF: predicated region fallthrough
CT: control target
= control target key end

     0   :  { %21 = vsyncpa [#allocation4], 0  ;;  %s2518_s0 = inlined_call_operand.vmem [shape: f32[32,4], index: 0, kind: input, shape index: {}]   ;;  %s2519_s1 = inlined_call_operand.vmem [shape: f32[32,32], index: 1, kind: input, shape index: {}]   ;;  %s2520_s2 = inlined_call_operand.hbm [shape: f32[4,32], index: 2, kind: input, shape index: {}]   ;;  %s2521_s3 = inlined_call_operand.vmem [shape: f32[1,32], index: 3, kind: input, shape index: {}]   ;;  %s2522_s4 = inlined_call_operand.hbm [shape: f32[32,32], index: 4, kind: input, shape index: {}]   ;;  %s2523_s5 = inlined_call_operand.vmem [shape: f32[1,32], index: 5, kind: input, shape index: {}]   ;;  %s2524_s6 = inlined_call_operand.hbm [shape: f32[32,32], index: 6, kind: input, shape index: {}]   ;;  %s2525_s7 = inlined_call_operand.hbm [shape: f32[1,32], index: 7, kind: input, shape index: {}]   ;;  %s2526_s8 = inlined_call_operand.vmem [shape: f32[32,32], index: 8, kind: input, shape index: {}]   ;;  %s2527_s9 = inlined_call_operand.vmem [shape: f32[1,32], index: 9, kind: input, shape index: {}]   ;;  %s2528_s10 = inlined_call_operand.vmem [shape: f32[1,32], index: 10, kind: input, shape index: {}]   ;;  %s2529_s11 = inlined_call_operand.<no memory space> [shape: f32[1], index: 11, kind: input, shape index: {}]   ;;  %s2530_s12 = inlined_call_operand.vmem [shape: f32[32,8], index: 12, kind: output, shape index: {0}]   ;;  %s2531_s13 = inlined_call_operand.hbm [shape: f32[32,32], index: 13, kind: output, shape index: {1}]   ;;  %s2532_s14 = inlined_call_operand.hbm [shape: f32[32,32], index: 14, kind: output, shape index: {2}]  }
   0x1   :  { %22 = vsyncpa [#allocation7], 0 }
   0x2   :  { %23 = vsyncpa [#allocation10], 0 }
   0x3   :  { %24 = vsyncpa [#allocation5], 0 }
   0x4   :  { %25 = vsyncpa [#allocation13], 0  ;;  %s1989_s29 = smov [#allocation6]   ;;  %s1847_s17 = scalar_lea.hbm %s2522_s4, 512 }
   0x5   :  { %s47_s30 = sshll.u32 %s1989_s29, 4  ;;  %p1848_p0 = scmp.ne.s32.totalorder %s2522_s4, %s1847_s17  ;;  %s48_s30 = int_to_ptr.vmem [resolvable:$true] %s47_s30 }
   0x6   :  { %p1851_p1 = scmp.lt.u32.totalorder %s1847_s17, %s2522_s4 }
   0x8   :  { %p1853_p2 = pnand %p1851_p1, %p1848_p0 }
   0xa   :  { %1856 = shalt.err (!%p1853_p2)
}
   0xb   :  { %s1857_s22 = scalar_lea.vmem %s48_s30, 512  ;;  %p1862_p4 = scmp.lt.s32.totalorder %s48_s30, %s48_s30 }
   0xc   :  { %p1858_p3 = scmp.ne.s32.totalorder %s48_s30, %s1857_s22  ;;  %p1863_p5 = scmp.lt.s32.totalorder %s1857_s22, %s1857_s22 }
   0xe   :  { %p1864_p6 = por %p1863_p5, %p1862_p4 }
  0x10   :  { %p1865_p7 = pnand %p1864_p6, %p1858_p3 }
  0x12   :  { %1868 = shalt.err (!%p1865_p7)
}
  0x13   :  { %s1990_s23 = smov 128   ;;  %s1991_s24 = smov 8  }
  0x14   :  { %53 = dma.hbm_to_vmem [thread:$0]  %s2522_s4, 512, %s48_s30, [#allocation7], %s1990_s23, %s1990_s23, %s1991_s24  }
  0x15   :  { %s1992_s27 = smov [#allocation3]   ;;  %s1993_s29 = smov [#allocation8]  }
  0x16   :  { %s36_s28 = sshll.u32 %s1992_s27, 4  ;;  %s61_s15 = sshll.u32 %s1993_s29, 4  ;;  %s37_s28 = int_to_ptr.vmem [resolvable:$true] %s36_s28  ;;  %s62_s15 = int_to_ptr.vmem [resolvable:$true] %s61_s15 }
  0x17   :  { %s1869_s18 = scalar_lea.hbm %s2520_s2, 64 }
  0x18   :  { %p1870_p8 = scmp.ne.s32.totalorder %s2520_s2, %s1869_s18  ;;  %p1873_p9 = scmp.lt.u32.totalorder %s1869_s18, %s2520_s2 }
  0x1a   :  { %p1875_p10 = pnand %p1873_p9, %p1870_p8 }
  0x1c   :  { %1878 = shalt.err (!%p1875_p10)
}
  0x1d   :  { %s1879_s4 = scalar_lea.vmem %s37_s28, 64  ;;  %p1884_p12 = scmp.lt.s32.totalorder %s37_s28, %s37_s28 }
  0x1e   :  { %p1880_p11 = scmp.ne.s32.totalorder %s37_s28, %s1879_s4  ;;  %p1885_p13 = scmp.lt.s32.totalorder %s1879_s4, %s1879_s4 }
  0x20   :  { %p1886_p0 = por %p1885_p13, %p1884_p12 }
  0x22   :  { %p1887_p1 = pnand %p1886_p0, %p1880_p11 }
  0x24   :  { %1890 = shalt.err (!%p1887_p1)
}
  0x25   :  { %39 = dma.hbm_to_vmem [thread:$0]  %s2520_s2, 64, %s37_s28, [#allocation4]  }
  0x26   :  { %s1891_s29 = scalar_lea.hbm %s2524_s6, 512 }
  0x27   :  { %p1892_p2 = scmp.ne.s32.totalorder %s2524_s6, %s1891_s29  ;;  %p1895_p3 = scmp.lt.u32.totalorder %s1891_s29, %s2524_s6 }
  0x29   :  { %p1897_p4 = pnand %p1895_p3, %p1892_p2 }
  0x2b   :  { %1900 = shalt.err (!%p1897_p4)
}
  0x2c   :  { %s1901_s20 = scalar_lea.vmem %s62_s15, 512  ;;  %p1906_p6 = scmp.lt.s32.totalorder %s62_s15, %s62_s15 }
  0x2d   :  { %p1902_p5 = scmp.ne.s32.totalorder %s62_s15, %s1901_s20  ;;  %p1907_p7 = scmp.lt.s32.totalorder %s1901_s20, %s1901_s20 }
  0x2f   :  { %p1908_p8 = por %p1907_p7, %p1906_p6 }
  0x31   :  { %p1909_p9 = pnand %p1908_p8, %p1902_p5 }
  0x33   :  { %1912 = shalt.err (!%p1909_p9)
}
  0x34   :  { %67 = dma.hbm_to_vmem [thread:$0]  %s2524_s6, 512, %s62_s15, [#allocation7], %s1990_s23, %s1990_s23, %s1991_s24  }
  0x35   :  { %s1994_s21 = smov [#allocation9]   ;;  %s1913_s25 = scalar_lea.hbm %s2525_s7, 16 }
  0x36   :  { %s74_s22 = sshll.u32 %s1994_s21, 4  ;;  %p1914_p10 = scmp.ne.s32.totalorder %s2525_s7, %s1913_s25  ;;  %s75_s22 = int_to_ptr.vmem [resolvable:$true] %s74_s22 }
  0x37   :  { %p1917_p11 = scmp.lt.u32.totalorder %s1913_s25, %s2525_s7 }
  0x39   :  { %p1919_p12 = pnand %p1917_p11, %p1914_p10 }
  0x3b   :  { %1922 = shalt.err (!%p1919_p12)
}
  0x3c   :  { %s1923_s17 = scalar_lea.vmem %s75_s22, 16  ;;  %s1927_s6 = scalar_lea.vmem %s75_s22, 32 }
  0x3d   :  { %p1924_p13 = scmp.ne.s32.totalorder %s75_s22, %s1923_s17  ;;  %p1928_p0 = scmp.lt.s32.totalorder %s75_s22, %s75_s22 }
  0x3e   :  { %p1929_p1 = scmp.lt.s32.totalorder %s1927_s6, %s1923_s17 }
  0x40   :  { %p1930_p2 = por %p1929_p1, %p1928_p0 }
  0x42   :  { %p1931_p3 = pnand %p1930_p2, %p1924_p13 }
  0x44   :  { %1934 = shalt.err (!%p1931_p3)
}
  0x45   :  { %77 = dma.hbm_to_vmem [thread:$0]  %s2525_s7, 16, %s75_s22, [#allocation10]  }
  0x46   :  { %1979 = dma.done.wait [#allocation4], 64  }
  0x47   :  { %1980 = vsyncadd [#allocation4], 4294967232 }
  0x48   :  { %1981 = dma.done.wait [#allocation7], 1024  }
  0x49   :  { %1982 = vsyncadd [#allocation7], 4294966272 }
  0x4a   :  { %1983 = dma.done.wait [#allocation10], 16  }
  0x4b   :  { %1984 = vsyncadd [#allocation10], 4294967280  ;;  %vm123_vm0 = vcmask 1043456   ;;  %vm110_vm1 = vcmask 31744   ;;  %v102_v0 = vld [vmem:[#allocation3] sm:$0xf] }
  0x4c   :  { %v98_v1 = vld [vmem:[%s2518_s0] sm:$0xff]  ;;  %v99_v2 = vld [vmem:[%s2518_s0 + $0x8] sm:$0xff]  ;;  %1565 = vmatprep.subr.msk.mxu0 %vm123_vm0, %v102_v0  ;;  %v100_v3 = vld [vmem:[%s2518_s0 + $0x10] sm:$0xff]  ;;  %vm227_vm2 = vcmask 261120   ;;  %s1996_s25 = smov [#allocation12]  }
  0x4d   :  { %1567 = vmatprep.mubr.msk.f32.mxu0 %vm110_vm1, %v98_v1  ;;  %v325_v4 = vld [vmem:[#allocation8] sm:$0xff]  ;;  %1566 = vmatpush3.msk.msra.mxu0 %vm123_vm0, %v102_v0  ;;  %v326_v5 = vld [vmem:[#allocation8 + $0x8] sm:$0xff]  ;;  %v101_v10 = vld [vmem:[%s2518_s0 + $0x18] sm:$0xff]  ;;  %s1422_s0 = sshll.u32 %s1996_s25, 4  ;;  %s2354_s0 = int_to_ptr.vmem [resolvable:$true] %s1422_s0 }
  0x4e   :  { %v216_v6 = vld [vmem:[#allocation6] sm:$0xff]  ;;  %v217_v7 = vld [vmem:[#allocation6 + $0x8] sm:$0xff]  ;;  %1568 = vmatmul.mubr.msk.f32.vlgmr.msra.gmra.mrb[0].mxu0 %vm110_vm1, %v99_v2  ;;  %v1707_v8 = vpack.c.bf16 %v326_v5, %v325_v4  ;;  %v327_v11 = vld [vmem:[#allocation8 + $0x10] sm:$0xff] }
  0x4f   :  { %v1699_v9 = vpack.c.bf16 %v217_v7, %v216_v6  ;;  %1570 = vmatprep.mubr.msk.f32.mxu0 %vm110_vm1, %v100_v3  ;;  %v328_v12 = vld [vmem:[#allocation8 + $0x18] sm:$0xff]  ;;  %v218_v14 = vld [vmem:[#allocation6 + $0x10] sm:$0xff]  ;;  %v470_v31 = vld [vmem:[%s2526_s8 + $0x8] sm:$0xff] }
  0x50   :  { %1708 = vmatprep.subr.bf16.mxu0 %v1707_v8  ;;  %v1711_v13 = vpack.c.bf16 %v328_v12, %v327_v11  ;;  %v219_v15 = vld [vmem:[#allocation6 + $0x18] sm:$0xff]  ;;  %v471_v33 = vld [vmem:[%s2526_s8 + $0x10] sm:$0xff]  ;;  %v1453_v37 = vld [vmem:[#allocation9] ss:$0 sm:$0xff] }
  0x51   :  { %1700 = vmatprep.subr.bf16.mxu1 %v1699_v9  ;;  %1710 = vmatpush3.bf16.msra.mxu0 %v1707_v8  ;;  %v1703_v16 = vpack.c.bf16 %v219_v15, %v218_v14  ;;  %v1442_v17 = vld [vmem:[%s2521_s3] ss:$0 sm:$0xff]  ;;  %v472_v34 = vld [vmem:[%s2526_s8 + $0x18] sm:$0xff]  ;;  %v438_v14 = vld [vmem:[%s2519_s1 + $0x8] sm:$0xff] }
  0x52   :  { %1702 = vmatpush3.bf16.msra.mxu1 %v1699_v9  ;;  %1571 = vmatmul.mubr.msk.f32.gmra.mrb[2].mxu0 %vm110_vm1, %v101_v10  ;;  %v469_v30 = vld [vmem:[%s2526_s8] sm:$0xff]  ;;  %v2171_v35 = vpack.c.bf16 %v472_v34, %v471_v33 }
  0x53   :  { %1712 = vmatprep.subr.bf16.mxu0 %v1711_v13  ;;  %1704 = vmatprep.subr.bf16.mxu1 %v1703_v16  ;;  %v2159_v32 = vpack.c.bf16 %v470_v31, %v469_v30  ;;  %v1448_v36 = vld [vmem:[%s2523_s5] ss:$0 sm:$0xff] }
  0x54   :  { %v437_v15 = vld [vmem:[%s2519_s1] sm:$0xff] }
  0x55   :  { %1714 = vmatpush3.bf16.msra.mxu0 %v1711_v13 }
  0x56   :  { %1706 = vmatpush3.bf16.msra.mxu1 %v1703_v16  ;;  %1724 = vmatprep.subr.bf16.mxu0 %v2159_v32 }
  0x57   :  { %1716 = vmatprep.subr.bf16.mxu1 %v2159_v32 }
 0x121   :  { %v1569_v18 = vpop.f32.mrb[0].mxu0 }
 0x122   :  { %v199_v19 = vadd.f32 %v1569_v18, %v1442_v17  ;;  %v193_v20 = vpop.f32.mrb[1].mxu0 }
 0x123   :  { %v194_v21 = vadd.f32 %v1442_v17, %v193_v20  ;;  %v2199_v20 = vld [vmem:[%s2528_s10] ss:$0 sm:$0xff] }
 0x124   :  { %v213_v24 = vmax.f32 %v199_v19, 0.0 }
 0x125   :  { %v212_v22 = vmax.f32 %v194_v21, 0.0  ;;  %v1572_v23 = vpop.f32.mrb[2].mxu0  ;;  %v440_v21 = vld [vmem:[%s2519_s1 + $0x18] sm:$0xff] }
 0x126   :  { %v209_v25 = vadd.f32 %v1572_v23, %v1442_v17  ;;  %v203_v26 = vpop.f32.mrb[3].mxu0  ;;  %v439_v23 = vld [vmem:[%s2519_s1 + $0x10] sm:$0xff] }
 0x127   :  { %v204_v27 = vadd.f32 %v1442_v17, %v203_v26  ;;  %1581 = vmatprep.mubr.msk.f32.mxu1 %vm227_vm2, %v212_v22  ;;  %1595 = vmatprep.mubr.msk.f32.mxu0 %vm227_vm2, %v212_v22 }
 0x128   :  { %1582 = vmatmul.mubr.msk.f32.vlgmr.msra.gmra.mrb[0].mxu1 %vm227_vm2, %v213_v24  ;;  %1596 = vmatmul.mubr.msk.f32.vlgmr.msra.gmra.mrb[4].mxu0 %vm227_vm2, %v213_v24  ;;  %v215_v29 = vmax.f32 %v209_v25, 0.0 }
 0x129   :  { %v214_v28 = vmax.f32 %v204_v27, 0.0  ;;  %1718 = vmatpush3.bf16.msra.mxu1 %v2159_v32  ;;  %1726 = vmatpush3.bf16.msra.mxu0 %v2159_v32 }
 0x12a   :  { %1720 = vmatprep.subr.bf16.mxu1 %v2171_v35  ;;  %1728 = vmatprep.subr.bf16.mxu0 %v2171_v35 }
 0x12b   :  { %1584 = vmatprep.mubr.msk.f32.mxu1 %vm227_vm2, %v214_v28  ;;  %1598 = vmatprep.mubr.msk.f32.mxu0 %vm227_vm2, %v214_v28 }
 0x12c   :  { %1585 = vmatmul.mubr.msk.f32.gmra.mrb[2].mxu1 %vm227_vm2, %v215_v29  ;;  %1599 = vmatmul.mubr.msk.f32.gmra.mrb[6].mxu0 %vm227_vm2, %v215_v29 }
 0x12d   :  { %1722 = vmatpush3.bf16.msra.mxu1 %v2171_v35  ;;  %1730 = vmatpush3.bf16.msra.mxu0 %v2171_v35 }
 0x12e   :  { %1732 = vmatprep.subr.bf16.mxu1 %v2159_v32  ;;  %1740 = vmatprep.subr.bf16.mxu0 %v2159_v32 }
 0x1fb   :  { %v1583_v38 = vpop.f32.mrb[0].mxu1  ;;  %v1597_v39 = vpop.f32.mrb[4].mxu0 }
 0x1fc   :  { %v312_v40 = vadd.f32 %v1583_v38, %v1448_v36  ;;  %v408_v41 = vadd.f32 %v1597_v39, %v1453_v37  ;;  %v306_v42 = vpop.f32.mrb[1].mxu1  ;;  %v402_v43 = vpop.f32.mrb[5].mxu0 }
 0x1fd   :  { %v307_v44 = vadd.f32 %v1448_v36, %v306_v42  ;;  %v403_v45 = vadd.f32 %v1453_v37, %v402_v43 }
 0x1fe   :  { %v422_v46 = vmax.f32 %v312_v40, -100.0  ;;  %v430_v47 = vmax.f32 %v408_v41, -100.0  ;;  %v2226_v41 = vld [vmem:[%s2527_s9] ss:$0 sm:$0xff]  ;;  %s1995_s9 = smov [#allocation11]  }
 0x1ff   :  { %v421_v48 = vmax.f32 %v307_v44, -100.0  ;;  %v429_v49 = vmax.f32 %v403_v45, -100.0  ;;  %v1586_v50 = vpop.f32.mrb[2].mxu1  ;;  %v1600_v51 = vpop.f32.mrb[6].mxu0  ;;  %s1410_s30 = sshll.u32 %s1995_s9, 4  ;;  %s1411_s30 = int_to_ptr.vmem [resolvable:$true] %s1410_s30 }
 0x200   :  { %v426_v52 = vmin.f32 %v422_v46, 85.0  ;;  %v434_v53 = vmin.f32 %v430_v47, 85.0  ;;  %v322_v54 = vadd.f32 %v1586_v50, %v1448_v36  ;;  %v418_v55 = vadd.f32 %v1600_v51, %v1453_v37  ;;  %v316_v56 = vpop.f32.mrb[3].mxu1  ;;  %v412_v57 = vpop.f32.mrb[7].mxu0  ;;  %s1935_s3 = scalar_lea.vmem %s1411_s30, 512  ;;  %p1940_p5 = scmp.lt.s32.totalorder %s1411_s30, %s1411_s30 }
 0x201   :  { %v425_v58 = vmin.f32 %v421_v48, 85.0  ;;  %v433_v59 = vmin.f32 %v429_v49, 85.0  ;;  %v317_v60 = vadd.f32 %v1448_v36, %v316_v56  ;;  %v413_v61 = vadd.f32 %v1453_v37, %v412_v57  ;;  %p1936_p4 = scmp.ne.s32.totalorder %s1411_s30, %s1935_s3  ;;  %p1941_p6 = scmp.lt.s32.totalorder %s1935_s3, %s1935_s3 }
 0x202   :  { %462 = vst.msk [vmem:[#allocation11 + $0x8] sm:$0xff] %vm227_vm2, %v426_v52  ;;  %v442_v62 = vmul.f32 0.5, %v434_v53  ;;  %466 = vst.msk [vmem:[#allocation12 + $0x8] sm:$0xff] %vm227_vm2, %v434_v53  ;;  %v424_v63 = vmax.f32 %v322_v54, -100.0  ;;  %v432_v0 = vmax.f32 %v418_v55, -100.0 }
 0x203   :  { %461 = vst.msk [vmem:[#allocation11] sm:$0xff] %vm227_vm2, %v425_v58  ;;  %v441_v1 = vmul.f32 0.5, %v433_v59  ;;  %465 = vst.msk [vmem:[#allocation12] sm:$0xff] %vm227_vm2, %v433_v59  ;;  %v423_v2 = vmax.f32 %v317_v60, -100.0  ;;  %v431_v3 = vmax.f32 %v413_v61, -100.0  ;;  %p1942_p7 = por %p1941_p6, %p1940_p5 }
 0x204   :  { %v447_v4 = vmul.f32 1.442695, %v442_v62  ;;  %v428_v5 = vmin.f32 %v424_v63, 85.0  ;;  %v436_v6 = vmin.f32 %v432_v0, 85.0 }
 0x205   :  { %v445_v7 = vmul.f32 1.442695, %v441_v1  ;;  %v427_v8 = vmin.f32 %v423_v2, 85.0  ;;  %v435_v9 = vmin.f32 %v431_v3, 85.0  ;;  %p1943_p8 = pnand %p1942_p7, %p1936_p4 }
 0x206   :  { %1783 = vpow2.f32 %v447_v4  ;;  %464 = vst.msk [vmem:[#allocation11 + $0x18] sm:$0xff] %vm227_vm2, %v428_v5  ;;  %v444_v10 = vmul.f32 0.5, %v436_v6  ;;  %468 = vst.msk [vmem:[#allocation12 + $0x18] sm:$0xff] %vm227_vm2, %v436_v6 }
 0x207   :  { %1785 = vpow2.f32 %v445_v7  ;;  %463 = vst.msk [vmem:[#allocation11 + $0x10] sm:$0xff] %vm227_vm2, %v427_v8  ;;  %v443_v11 = vmul.f32 0.5, %v435_v9  ;;  %467 = vst.msk [vmem:[#allocation12 + $0x10] sm:$0xff] %vm227_vm2, %v435_v9 }
 0x208   :  { %v451_v12 = vmul.f32 1.442695, %v444_v10 }
 0x209   :  { %v449_v13 = vmul.f32 1.442695, %v443_v11 }
 0x20a   :  { %1787 = vpow2.f32 %v451_v12 }
 0x20b   :  { %1789 = vpow2.f32 %v449_v13 }
 0x210   :  { %v1784_v16 = vpop.eup %1783 }
 0x211   :  { %v1786_v17 = vpop.eup %1785  ;;  %v454_v18 = vmul.f32 %v1784_v16, %v438_v14 }
 0x212   :  { %v453_v19 = vmul.f32 %v1786_v17, %v437_v15 }
 0x213   :  { %v458_v22 = vadd.f32 %v454_v18, %v426_v52 }
 0x214   :  { %v1788_v24 = vpop.eup %1787  ;;  %v457_v25 = vadd.f32 %v453_v19, %v425_v58 }
 0x215   :  { %v1790_v26 = vpop.eup %1789  ;;  %v486_v27 = vmul.f32 %v2199_v20, %v458_v22  ;;  %v456_v28 = vmul.f32 %v1788_v24, %v440_v21 }
 0x216   :  { %1609 = vmatprep.mubr.msk.f32.mxu1 %vm227_vm2, %v457_v25  ;;  %v455_v29 = vmul.f32 %v1790_v26, %v439_v23  ;;  %v485_v33 = vmul.f32 %v2199_v20, %v457_v25 }
 0x217   :  { %1610 = vmatmul.mubr.msk.f32.vlgmr.msra.gmra.mrb[4].mxu1 %vm227_vm2, %v458_v22  ;;  %v492_v30 = vsel %vm227_vm2, %v486_v27, 0.0  ;;  %v460_v31 = vadd.f32 %v456_v28, %v428_v5 }
 0x218   :  { %493 = vadd.xlane.f32.xlu0 %v492_v30  ;;  %v459_v34 = vadd.f32 %v455_v29, %v427_v8  ;;  %1734 = vmatpush3.bf16.msra.mxu1 %v2159_v32  ;;  %v489_v38 = vsel %vm227_vm2, %v485_v33, 0.0 }
 0x219   :  { %v488_v36 = vmul.f32 %v2199_v20, %v460_v31  ;;  %1736 = vmatprep.subr.bf16.mxu1 %v2171_v35 }
 0x21a   :  { %1612 = vmatprep.mubr.msk.f32.mxu1 %vm227_vm2, %v459_v34  ;;  %v487_v39 = vmul.f32 %v2199_v20, %v459_v34 }
 0x21b   :  { %1613 = vmatmul.mubr.msk.f32.gmra.mrb[6].mxu1 %vm227_vm2, %v460_v31  ;;  %v498_v37 = vsel %vm227_vm2, %v488_v36, 0.0 }
 0x21c   :  { %499 = vadd.xlane.f32.xlu1 %v498_v37  ;;  %490 = vadd.xlane.f32.xlu0 %v489_v38  ;;  %v495_v40 = vsel %vm227_vm2, %v487_v39, 0.0 }
 0x21d   :  { %1738 = vmatpush3.bf16.msra.mxu1 %v2171_v35 }
 0x21e   :  { %1748 = vmatprep.subr.bf16.mxu1 %v2159_v32 }
 0x220   :  { %496 = vadd.xlane.f32.xlu1 %v495_v40 }
 0x2ea   :  { %v1611_v42 = vpop.f32.mrb[4].mxu1 }
 0x2eb   :  { %v600_v43 = vadd.f32 %v1611_v42, %v2226_v41  ;;  %v594_v44 = vpop.f32.mrb[5].mxu1 }
 0x2ec   :  { %v595_v45 = vadd.f32 %v2226_v41, %v594_v44 }
 0x2ed   :  { %1791 = vtanh.f32 %v600_v43 }
 0x2ee   :  { %1793 = vtanh.f32 %v595_v45  ;;  %v1614_v46 = vpop.f32.mrb[6].mxu1 }
 0x2ef   :  { %v610_v47 = vadd.f32 %v1614_v46, %v2226_v41  ;;  %v604_v48 = vpop.f32.mrb[7].mxu1 }
 0x2f0   :  { %v605_v49 = vadd.f32 %v2226_v41, %v604_v48 }
 0x2f1   :  { %1795 = vtanh.f32 %v610_v47 }
 0x2f2   :  { %1797 = vtanh.f32 %v605_v49 }
 0x2f7   :  { %v1792_v50 = vpop.eup %1791 }
 0x2f8   :  { %v1794_v51 = vpop.eup %1793  ;;  %v619_v52 = vmul.f32 %v1792_v50, %v2199_v20 }
 0x2f9   :  { %1623 = vmatprep.mubr.msk.f32.mxu0 %vm227_vm2, %v1794_v51  ;;  %v618_v53 = vmul.f32 %v1794_v51, %v2199_v20 }
 0x2fa   :  { %1624 = vmatmul.mubr.msk.f32.vlgmr.msra.gmra.mrb[8].mxu0 %vm227_vm2, %v1792_v50  ;;  %v625_v54 = vsel %vm227_vm2, %v619_v52, 0.0 }
 0x2fb   :  { %v1796_v55 = vpop.eup %1795  ;;  %626 = vadd.xlane.f32.xlu1 %v625_v54  ;;  %v622_v56 = vsel %vm227_vm2, %v618_v53, 0.0  ;;  %1742 = vmatpush3.bf16.msra.mxu0 %v2159_v32 }
 0x2fc   :  { %v1798_v57 = vpop.eup %1797  ;;  %623 = vadd.xlane.f32.xlu0 %v622_v56  ;;  %v621_v58 = vmul.f32 %v1796_v55, %v2199_v20  ;;  %1744 = vmatprep.subr.bf16.mxu0 %v2171_v35 }
 0x2fd   :  { %1626 = vmatprep.mubr.msk.f32.mxu0 %vm227_vm2, %v1798_v57  ;;  %v620_v59 = vmul.f32 %v1798_v57, %v2199_v20 }
 0x2fe   :  { %1627 = vmatmul.mubr.msk.f32.gmra.mrb[10].mxu0 %vm227_vm2, %v1796_v55  ;;  %v631_v60 = vsel %vm227_vm2, %v621_v58, 0.0 }
 0x2ff   :  { %632 = vadd.xlane.f32.xlu1 %v631_v60  ;;  %v628_v61 = vsel %vm227_vm2, %v620_v59, 0.0  ;;  %1746 = vmatpush3.bf16.msra.mxu0 %v2171_v35 }
 0x300   :  { %629 = vadd.xlane.f32.xlu0 %v628_v61  ;;  %1756 = vmatprep.subr.bf16.mxu0 %v2159_v32 }
 0x3cd   :  { %v1625_v62 = vpop.f32.mrb[8].mxu0 }
 0x3ce   :  { %v726_v63 = vadd.f32 %v1625_v62, %v2226_v41  ;;  %v720_v0 = vpop.f32.mrb[9].mxu0 }
 0x3cf   :  { %v721_v1 = vadd.f32 %v2226_v41, %v720_v0 }
 0x3d0   :  { %1799 = vtanh.f32 %v726_v63 }
 0x3d1   :  { %1801 = vtanh.f32 %v721_v1  ;;  %v1628_v2 = vpop.f32.mrb[10].mxu0 }
 0x3d2   :  { %v736_v3 = vadd.f32 %v1628_v2, %v2226_v41  ;;  %v730_v4 = vpop.f32.mrb[11].mxu0 }
 0x3d3   :  { %v731_v5 = vadd.f32 %v2226_v41, %v730_v4 }
 0x3d4   :  { %1803 = vtanh.f32 %v736_v3 }
 0x3d5   :  { %1805 = vtanh.f32 %v731_v5 }
 0x3da   :  { %v1800_v6 = vpop.eup %1799 }
 0x3db   :  { %v1802_v7 = vpop.eup %1801  ;;  %v745_v8 = vmul.f32 %v1800_v6, %v2199_v20 }
 0x3dc   :  { %1637 = vmatprep.mubr.msk.f32.mxu1 %vm227_vm2, %v1802_v7  ;;  %v744_v9 = vmul.f32 %v1802_v7, %v2199_v20 }
 0x3dd   :  { %1638 = vmatmul.mubr.msk.f32.vlgmr.msra.gmra.mrb[8].mxu1 %vm227_vm2, %v1800_v6  ;;  %v751_v10 = vsel %vm227_vm2, %v745_v8, 0.0 }
 0x3de   :  { %v1804_v11 = vpop.eup %1803  ;;  %752 = vadd.xlane.f32.xlu1 %v751_v10  ;;  %v748_v12 = vsel %vm227_vm2, %v744_v9, 0.0  ;;  %1750 = vmatpush3.bf16.msra.mxu1 %v2159_v32 }
 0x3df   :  { %v1806_v13 = vpop.eup %1805  ;;  %749 = vadd.xlane.f32.xlu0 %v748_v12  ;;  %v747_v14 = vmul.f32 %v1804_v11, %v2199_v20  ;;  %1752 = vmatprep.subr.bf16.mxu1 %v2171_v35 }
 0x3e0   :  { %1640 = vmatprep.mubr.msk.f32.mxu1 %vm227_vm2, %v1806_v13  ;;  %v746_v15 = vmul.f32 %v1806_v13, %v2199_v20 }
 0x3e1   :  { %1641 = vmatmul.mubr.msk.f32.gmra.mrb[10].mxu1 %vm227_vm2, %v1804_v11  ;;  %v757_v16 = vsel %vm227_vm2, %v747_v14, 0.0 }
 0x3e2   :  { %758 = vadd.xlane.f32.xlu1 %v757_v16  ;;  %v754_v17 = vsel %vm227_vm2, %v746_v15, 0.0  ;;  %1754 = vmatpush3.bf16.msra.mxu1 %v2171_v35 }
 0x3e3   :  { %755 = vadd.xlane.f32.xlu0 %v754_v17  ;;  %1771 = vmatprep.subr.bf16.mxu1 %v2159_v32 }
 0x4b0   :  { %v1639_v18 = vpop.f32.mrb[8].mxu1 }
 0x4b1   :  { %v852_v19 = vadd.f32 %v1639_v18, %v2226_v41  ;;  %v846_v21 = vpop.f32.mrb[9].mxu1 }
 0x4b2   :  { %v847_v22 = vadd.f32 %v2226_v41, %v846_v21 }
 0x4b3   :  { %1807 = vtanh.f32 %v852_v19 }
 0x4b4   :  { %1809 = vtanh.f32 %v847_v22  ;;  %v1642_v23 = vpop.f32.mrb[10].mxu1 }
 0x4b5   :  { %v862_v24 = vadd.f32 %v1642_v23, %v2226_v41  ;;  %v856_v25 = vpop.f32.mrb[11].mxu1 }
 0x4b6   :  { %v857_v26 = vadd.f32 %v2226_v41, %v856_v25 }
 0x4b7   :  { %1811 = vtanh.f32 %v862_v24 }
 0x4b8   :  { %1813 = vtanh.f32 %v857_v26 }
 0x4bd   :  { %v1808_v27 = vpop.eup %1807 }
 0x4be   :  { %v1810_v28 = vpop.eup %1809  ;;  %v871_v29 = vmul.f32 %v1808_v27, %v2199_v20 }
 0x4bf   :  { %1651 = vmatprep.mubr.msk.f32.mxu0 %vm227_vm2, %v1810_v28  ;;  %v870_v30 = vmul.f32 %v1810_v28, %v2199_v20 }
 0x4c0   :  { %1652 = vmatmul.mubr.msk.f32.vlgmr.msra.gmra.mrb[12].mxu0 %vm227_vm2, %v1808_v27  ;;  %v877_v31 = vsel %vm227_vm2, %v871_v29, 0.0 }
 0x4c1   :  { %v1812_v33 = vpop.eup %1811  ;;  %878 = vadd.xlane.f32.xlu1 %v877_v31  ;;  %v874_v34 = vsel %vm227_vm2, %v870_v30, 0.0  ;;  %1758 = vmatpush3.bf16.msra.mxu0 %v2159_v32 }
 0x4c2   :  { %v1814_v36 = vpop.eup %1813  ;;  %875 = vadd.xlane.f32.xlu0 %v874_v34  ;;  %v873_v37 = vmul.f32 %v1812_v33, %v2199_v20  ;;  %1760 = vmatprep.subr.bf16.mxu0 %v2171_v35 }
 0x4c3   :  { %1654 = vmatprep.mubr.msk.f32.mxu0 %vm227_vm2, %v1814_v36  ;;  %v872_v38 = vmul.f32 %v1814_v36, %v2199_v20 }
 0x4c4   :  { %1655 = vmatmul.mubr.msk.f32.gmra.mrb[14].mxu0 %vm227_vm2, %v1812_v33  ;;  %v883_v39 = vsel %vm227_vm2, %v873_v37, 0.0 }
 0x4c5   :  { %884 = vadd.xlane.f32.xlu1 %v883_v39  ;;  %v880_v40 = vsel %vm227_vm2, %v872_v38, 0.0  ;;  %1762 = vmatpush3.bf16.msra.mxu0 %v2171_v35 }
 0x4c6   :  { %881 = vadd.xlane.f32.xlu0 %v880_v40  ;;  %1764 = vmatprep.subr.bf16.mxu0 %v2159_v32 }
 0x593   :  { %v1653_v42 = vpop.f32.mrb[12].mxu0 }
 0x594   :  { %v978_v43 = vadd.f32 %v1653_v42, %v2226_v41  ;;  %v972_v44 = vpop.f32.mrb[13].mxu0 }
 0x595   :  { %v973_v45 = vadd.f32 %v2226_v41, %v972_v44 }
 0x596   :  { %1815 = vtanh.f32 %v978_v43 }
 0x597   :  { %1817 = vtanh.f32 %v973_v45  ;;  %v1656_v46 = vpop.f32.mrb[14].mxu0 }
 0x598   :  { %v988_v47 = vadd.f32 %v1656_v46, %v2226_v41  ;;  %v982_v48 = vpop.f32.mrb[15].mxu0 }
 0x599   :  { %v983_v49 = vadd.f32 %v2226_v41, %v982_v48 }
 0x59a   :  { %1819 = vtanh.f32 %v988_v47 }
 0x59b   :  { %1821 = vtanh.f32 %v983_v49 }
 0x5a0   :  { %v1816_v50 = vpop.eup %1815 }
 0x5a1   :  { %v1818_v51 = vpop.eup %1817  ;;  %v997_v52 = vmul.f32 %v1816_v50, %v2199_v20 }
 0x5a2   :  { %1665 = vmatprep.mubr.msk.f32.mxu1 %vm227_vm2, %v1818_v51  ;;  %v996_v53 = vmul.f32 %v1818_v51, %v2199_v20 }
 0x5a3   :  { %1666 = vmatmul.mubr.msk.f32.vlgmr.msra.gmra.mrb[12].mxu1 %vm227_vm2, %v1816_v50  ;;  %v1003_v54 = vsel %vm227_vm2, %v997_v52, 0.0 }
 0x5a4   :  { %v1820_v55 = vpop.eup %1819  ;;  %1004 = vadd.xlane.f32.xlu1 %v1003_v54  ;;  %v1000_v56 = vsel %vm227_vm2, %v996_v53, 0.0  ;;  %1773 = vmatpush3.bf16.msra.mxu1 %v2159_v32 }
 0x5a5   :  { %v1822_v57 = vpop.eup %1821  ;;  %1001 = vadd.xlane.f32.xlu0 %v1000_v56  ;;  %v999_v58 = vmul.f32 %v1820_v55, %v2199_v20  ;;  %1772 = vmatprep.subr.bf16.mxu1 %v2171_v35 }
 0x5a6   :  { %1668 = vmatprep.mubr.msk.f32.mxu1 %vm227_vm2, %v1822_v57  ;;  %v998_v59 = vmul.f32 %v1822_v57, %v2199_v20 }
 0x5a7   :  { %1669 = vmatmul.mubr.msk.f32.gmra.mrb[14].mxu1 %vm227_vm2, %v1820_v55  ;;  %v1009_v60 = vsel %vm227_vm2, %v999_v58, 0.0 }
 0x5a8   :  { %1010 = vadd.xlane.f32.xlu1 %v1009_v60  ;;  %v1006_v61 = vsel %vm227_vm2, %v998_v59, 0.0  ;;  %1774 = vmatpush3.bf16.msra.mxu1 %v2171_v35 }
 0x5a9   :  { %1007 = vadd.xlane.f32.xlu0 %v1006_v61 }
 0x676   :  { %v1667_v62 = vpop.f32.mrb[12].mxu1 }
 0x677   :  { %v1104_v63 = vadd.f32 %v1667_v62, %v2226_v41  ;;  %v1098_v0 = vpop.f32.mrb[13].mxu1 }
 0x678   :  { %v1099_v1 = vadd.f32 %v2226_v41, %v1098_v0 }
 0x679   :  { %1823 = vtanh.f32 %v1104_v63 }
 0x67a   :  { %1825 = vtanh.f32 %v1099_v1  ;;  %v1670_v2 = vpop.f32.mrb[14].mxu1 }
 0x67b   :  { %v1114_v3 = vadd.f32 %v1670_v2, %v2226_v41  ;;  %v1108_v4 = vpop.f32.mrb[15].mxu1 }
 0x67c   :  { %v1109_v5 = vadd.f32 %v2226_v41, %v1108_v4 }
 0x67d   :  { %1827 = vtanh.f32 %v1114_v3 }
 0x67e   :  { %1829 = vtanh.f32 %v1109_v5 }
 0x683   :  { %v1824_v6 = vpop.eup %1823 }
 0x684   :  { %v1826_v7 = vpop.eup %1825  ;;  %v1123_v8 = vmul.f32 %v1824_v6, %v2199_v20 }
 0x685   :  { %1679 = vmatprep.mubr.msk.f32.mxu0 %vm227_vm2, %v1826_v7  ;;  %v1122_v9 = vmul.f32 %v1826_v7, %v2199_v20 }
 0x686   :  { %1680 = vmatmul.mubr.msk.f32.vlgmr.msra.gmra.mrb[16].mxu0 %vm227_vm2, %v1824_v6  ;;  %v1129_v10 = vsel %vm227_vm2, %v1123_v8, 0.0 }
 0x687   :  { %v1828_v11 = vpop.eup %1827  ;;  %1130 = vadd.xlane.f32.xlu1 %v1129_v10  ;;  %v1126_v12 = vsel %vm227_vm2, %v1122_v9, 0.0  ;;  %1766 = vmatpush3.bf16.msra.mxu0 %v2159_v32 }
 0x688   :  { %v1830_v13 = vpop.eup %1829  ;;  %1127 = vadd.xlane.f32.xlu0 %v1126_v12  ;;  %v1125_v14 = vmul.f32 %v1828_v11, %v2199_v20  ;;  %1768 = vmatprep.subr.bf16.mxu0 %v2171_v35 }
 0x689   :  { %1682 = vmatprep.mubr.msk.f32.mxu0 %vm227_vm2, %v1830_v13  ;;  %v1124_v15 = vmul.f32 %v1830_v13, %v2199_v20 }
 0x68a   :  { %1683 = vmatmul.mubr.msk.f32.gmra.mrb[18].mxu0 %vm227_vm2, %v1828_v11  ;;  %v1135_v16 = vsel %vm227_vm2, %v1125_v14, 0.0 }
 0x68b   :  { %1136 = vadd.xlane.f32.xlu1 %v1135_v16  ;;  %v1132_v17 = vsel %vm227_vm2, %v1124_v15, 0.0  ;;  %1770 = vmatpush3.bf16.msra.mxu0 %v2171_v35 }
 0x68c   :  { %1133 = vadd.xlane.f32.xlu0 %v1132_v17 }
 0x759   :  { %v1681_v32 = vpop.f32.mrb[16].mxu0 }
 0x75a   :  { %v1230_v18 = vadd.f32 %v1681_v32, %v2226_v41  ;;  %v1224_v19 = vpop.f32.mrb[17].mxu0 }
 0x75b   :  { %v1225_v21 = vadd.f32 %v2226_v41, %v1224_v19 }
 0x75c   :  { %1831 = vtanh.f32 %v1230_v18 }
 0x75d   :  { %1833 = vtanh.f32 %v1225_v21  ;;  %v1684_v22 = vpop.f32.mrb[18].mxu0 }
 0x75e   :  { %v1240_v23 = vadd.f32 %v1684_v22, %v2226_v41  ;;  %v1234_v24 = vpop.f32.mrb[19].mxu0 }
 0x75f   :  { %v1235_v25 = vadd.f32 %v2226_v41, %v1234_v24 }
 0x760   :  { %1835 = vtanh.f32 %v1240_v23 }
 0x761   :  { %1837 = vtanh.f32 %v1235_v25 }
 0x766   :  { %v1832_v26 = vpop.eup %1831 }
 0x767   :  { %v1834_v27 = vpop.eup %1833  ;;  %v1249_v35 = vmul.f32 %v1832_v26, %v2199_v20 }
 0x768   :  { %1693 = vmatprep.mubr.msk.f32.mxu0 %vm227_vm2, %v1834_v27  ;;  %v1248_v28 = vmul.f32 %v1834_v27, %v2199_v20 }
 0x769   :  { %1694 = vmatmul.mubr.msk.f32.vlgmr.msra.gmra.mrb[20].mxu0 %vm227_vm2, %v1832_v26  ;;  %v1255_v29 = vsel %vm227_vm2, %v1249_v35, 0.0 }
 0x76a   :  { %v1836_v30 = vpop.eup %1835  ;;  %1256 = vadd.xlane.f32.xlu1 %v1255_v29  ;;  %v1252_v31 = vsel %vm227_vm2, %v1248_v28, 0.0 }
 0x76b   :  { %v1838_v33 = vpop.eup %1837  ;;  %1253 = vadd.xlane.f32.xlu0 %v1252_v31  ;;  %v1251_v34 = vmul.f32 %v1836_v30, %v2199_v20 }
 0x76c   :  { %1696 = vmatprep.mubr.msk.f32.mxu1 %vm227_vm2, %v1838_v33  ;;  %v1250_v36 = vmul.f32 %v1838_v33, %v2199_v20 }
 0x76d   :  { %1697 = vmatmul.mubr.msk.f32.vlgmr.msra.gmra.mrb[16].mxu1 %vm227_vm2, %v1836_v30  ;;  %v1261_v37 = vsel %vm227_vm2, %v1251_v34, 0.0 }
 0x76e   :  { %1262 = vadd.xlane.f32.xlu1 %v1261_v37  ;;  %v1258_v38 = vsel %vm227_vm2, %v1250_v36, 0.0 }
 0x76f   :  { %1259 = vadd.xlane.f32.xlu0 %v1258_v38 }
 0x83c   :  { %v1695_v39 = vpop.f32.mrb[20].mxu0 }
 0x83d   :  { %v1356_v40 = vadd.f32 %v1695_v39, %v2226_v41  ;;  %v1350_v42 = vpop.f32.mrb[21].mxu0 }
 0x83e   :  { %v1351_v43 = vadd.f32 %v2226_v41, %v1350_v42 }
 0x83f   :  { %1839 = vtanh.f32 %v1356_v40 }
 0x840   :  { %1841 = vtanh.f32 %v1351_v43  ;;  %v1698_v44 = vpop.f32.mrb[16].mxu1 }
 0x841   :  { %v1366_v45 = vadd.f32 %v1698_v44, %v2226_v41  ;;  %v1360_v46 = vpop.f32.mrb[17].mxu1 }
 0x842   :  { %v1361_v47 = vadd.f32 %v2226_v41, %v1360_v46 }
 0x843   :  { %1843 = vtanh.f32 %v1366_v45 }
 0x844   :  { %1845 = vtanh.f32 %v1361_v47 }
 0x849   :  { %v1840_v48 = vpop.eup %1839 }
 0x84a   :  { %v1842_v49 = vpop.eup %1841  ;;  %v1375_v50 = vmul.f32 %v1840_v48, %v2199_v20 }
 0x84b   :  { %v1374_v51 = vmul.f32 %v1842_v49, %v2199_v20 }
 0x84c   :  { %v1381_v52 = vsel %vm227_vm2, %v1375_v50, 0.0 }
 0x84d   :  { %v1844_v53 = vpop.eup %1843  ;;  %1382 = vadd.xlane.f32.xlu1 %v1381_v52  ;;  %v1378_v54 = vsel %vm227_vm2, %v1374_v51, 0.0 }
 0x84e   :  { %v1846_v55 = vpop.eup %1845  ;;  %1379 = vadd.xlane.f32.xlu0 %v1378_v54  ;;  %v1377_v56 = vmul.f32 %v1844_v53, %v2199_v20 }
 0x84f   :  { %v1376_v41 = vmul.f32 %v1846_v55, %v2199_v20 }
 0x850   :  { %v1387_v57 = vsel %vm227_vm2, %v1377_v56, 0.0 }
 0x851   :  { %1388 = vadd.xlane.f32.xlu1 %v1387_v57  ;;  %v1384_v58 = vsel %vm227_vm2, %v1376_v41, 0.0 }
 0x852   :  { %1385 = vadd.xlane.f32.xlu0 %v1384_v58 }
 0x853   :  { %1946 = shalt.err (!%p1943_p8)
}
 0x854   :  { %s1947_s29 = scalar_lea.hbm %s2531_s13, 512 }
 0x855   :  { %p1948_p9 = scmp.ne.s32.totalorder %s2531_s13, %s1947_s29  ;;  %p1951_p10 = scmp.lt.u32.totalorder %s1947_s29, %s2531_s13 }
 0x857   :  { %p1953_p11 = pnand %p1951_p10, %p1948_p9 }
 0x859   :  { %1956 = shalt.err (!%p1953_p11)
}
 0x85a   :  { %1416 = dma.vmem_to_hbm [thread:$0]  %s1411_s30, 512, %s2531_s13, [#allocation5], %s1990_s23, %s1990_s23, %s1991_s24  }
 0x85b   :  { %s1957_s8 = scalar_lea.vmem %s2354_s0, 512  ;;  %p1962_p13 = scmp.lt.s32.totalorder %s2354_s0, %s2354_s0 }
 0x85c   :  { %p1958_p12 = scmp.ne.s32.totalorder %s2354_s0, %s1957_s8  ;;  %p1963_p0 = scmp.lt.s32.totalorder %s1957_s8, %s1957_s8 }
 0x85e   :  { %p1964_p1 = por %p1963_p0, %p1962_p13 }
 0x860   :  { %p1965_p2 = pnand %p1964_p1, %p1958_p12 }
 0x862   :  { %1968 = shalt.err (!%p1965_p2)
}
 0x863   :  { %s1969_s2 = scalar_lea.hbm %s2532_s14, 512 }
 0x864   :  { %p1970_p3 = scmp.ne.s32.totalorder %s2532_s14, %s1969_s2  ;;  %p1973_p4 = scmp.lt.u32.totalorder %s1969_s2, %s2532_s14 }
 0x866   :  { %p1975_p5 = pnand %p1973_p4, %p1970_p3 }
 0x868   :  { %1978 = shalt.err (!%p1975_p5)
}
 0x869   :  { %1428 = dma.vmem_to_hbm [thread:$0]  %s2354_s0, 512, %s2532_s14, [#allocation13], %s1990_s23, %s1990_s23, %s1991_s24   ;;  %v500_v20 = vpop.xlane.xlu1 %499  ;;  %v494_v59 = vpop.xlane.xlu0 %493  ;;  %v476_v14 = vlaneseq  ;;  %vm1398_vm11 = vcmask 64512  }
 0x86a   :  { %v2396_v32 = vstv %s2529_s11 }
 0x86b   :  { %v2391_v17 = vand.u32 127, %v476_v14  ;;  %v503_v19 = vadd.f32 %v2396_v32, %v494_v59  ;;  %v505_v21 = vadd.f32 %v2396_v32, %v500_v20 }
 0x86d   :  { %v497_v60 = vpop.xlane.xlu1 %496  ;;  %v491_v61 = vpop.xlane.xlu0 %490  ;;  %vm478_vm3 = vcmp.eq.s32.totalorder %v2391_v17, 0  ;;  %vm617_vm4 = vcmp.eq.s32.totalorder %v2391_v17, 1  ;;  %vm743_vm5 = vcmp.eq.s32.totalorder %v2391_v17, 2  ;;  %vm869_vm6 = vcmp.eq.s32.totalorder %v2391_v17, 3 }
 0x86e   :  { %v502_v23 = vadd.f32 %v2396_v32, %v491_v61  ;;  %v504_v24 = vadd.f32 %v2396_v32, %v497_v60  ;;  %v507_v28 = vsel %vm478_vm3, %v503_v19, 0.0  ;;  %v509_v29 = vsel %vm478_vm3, %v505_v21, 0.0 }
 0x86f   :  { %vm995_vm7 = vcmp.eq.s32.totalorder %v2391_v17, 4  ;;  %vm1121_vm8 = vcmp.eq.s32.totalorder %v2391_v17, 5  ;;  %vm1247_vm9 = vcmp.eq.s32.totalorder %v2391_v17, 6  ;;  %vm1373_vm10 = vcmp.eq.s32.totalorder %v2391_v17, 7 }
 0x870   :  { %v506_v34 = vsel %vm478_vm3, %v502_v23, 0.0  ;;  %v508_v38 = vsel %vm478_vm3, %v504_v24, 0.0 }
 0x871   :  { %v627_v62 = vpop.xlane.xlu1 %626  ;;  %v624_v63 = vpop.xlane.xlu0 %623 }
 0x872   :  { %v635_v25 = vadd.f32 %v627_v62, %v2396_v32  ;;  %v634_v26 = vadd.f32 %v624_v63, %v2396_v32 }
 0x874   :  { %v639_v39 = vsel %vm617_vm4, %v635_v25, %v507_v28  ;;  %v638_v43 = vsel %vm617_vm4, %v634_v26, %v506_v34 }
 0x875   :  { %v633_v0 = vpop.xlane.xlu1 %632  ;;  %v630_v1 = vpop.xlane.xlu0 %629 }
 0x876   :  { %v637_v27 = vadd.f32 %v633_v0, %v2396_v32  ;;  %v636_v30 = vadd.f32 %v630_v1, %v2396_v32 }
 0x878   :  { %v641_v44 = vsel %vm617_vm4, %v637_v27, %v509_v29  ;;  %v640_v46 = vsel %vm617_vm4, %v636_v30, %v508_v38 }
 0x879   :  { %v753_v2 = vpop.xlane.xlu1 %752  ;;  %v750_v3 = vpop.xlane.xlu0 %749 }
 0x87a   :  { %v761_v31 = vadd.f32 %v753_v2, %v2396_v32  ;;  %v760_v36 = vadd.f32 %v750_v3, %v2396_v32 }
 0x87c   :  { %v765_v47 = vsel %vm743_vm5, %v761_v31, %v639_v39  ;;  %v764_v50 = vsel %vm743_vm5, %v760_v36, %v638_v43 }
 0x87d   :  { %v759_v4 = vpop.xlane.xlu1 %758  ;;  %v756_v5 = vpop.xlane.xlu0 %755 }
 0x87e   :  { %v763_v37 = vadd.f32 %v759_v4, %v2396_v32  ;;  %v762_v40 = vadd.f32 %v756_v5, %v2396_v32 }
 0x880   :  { %v767_v51 = vsel %vm743_vm5, %v763_v37, %v641_v44  ;;  %v766_v54 = vsel %vm743_vm5, %v762_v40, %v640_v46 }
 0x881   :  { %v879_v6 = vpop.xlane.xlu1 %878  ;;  %v876_v7 = vpop.xlane.xlu0 %875 }
 0x882   :  { %v887_v42 = vadd.f32 %v879_v6, %v2396_v32  ;;  %v886_v45 = vadd.f32 %v876_v7, %v2396_v32 }
 0x884   :  { %v891_v55 = vsel %vm869_vm6, %v887_v42, %v765_v47  ;;  %v890_v57 = vsel %vm869_vm6, %v886_v45, %v764_v50 }
 0x885   :  { %v885_v8 = vpop.xlane.xlu1 %884  ;;  %v882_v9 = vpop.xlane.xlu0 %881 }
 0x886   :  { %v889_v58 = vadd.f32 %v885_v8, %v2396_v32  ;;  %v888_v20 = vadd.f32 %v882_v9, %v2396_v32 }
 0x889   :  { %v1005_v10 = vpop.xlane.xlu1 %1004  ;;  %v1002_v11 = vpop.xlane.xlu0 %1001 }
 0x88a   :  { %v1013_v48 = vadd.f32 %v1005_v10, %v2396_v32  ;;  %v1012_v49 = vadd.f32 %v1002_v11, %v2396_v32  ;;  %v893_v11 = vsel %vm869_vm6, %v889_v58, %v767_v51 }
 0x88c   :  { %v1017_v60 = vsel %vm995_vm7, %v1013_v48, %v891_v55  ;;  %v1016_v61 = vsel %vm995_vm7, %v1012_v49, %v890_v57 }
 0x88d   :  { %v1011_v12 = vpop.xlane.xlu1 %1010  ;;  %v1008_v13 = vpop.xlane.xlu0 %1007 }
 0x88e   :  { %v1015_v63 = vadd.f32 %v1011_v12, %v2396_v32  ;;  %v1014_v0 = vadd.f32 %v1008_v13, %v2396_v32 }
 0x891   :  { %v1131_v15 = vpop.xlane.xlu1 %1130  ;;  %v1128_v16 = vpop.xlane.xlu0 %1127 }
 0x892   :  { %v1139_v52 = vadd.f32 %v1131_v15, %v2396_v32  ;;  %v1138_v56 = vadd.f32 %v1128_v16, %v2396_v32  ;;  %v892_v15 = vsel %vm869_vm6, %v888_v20, %v766_v54  ;;  %v1019_v16 = vsel %vm995_vm7, %v1015_v63, %v893_v11 }
 0x893   :  { %v1018_v21 = vsel %vm995_vm7, %v1014_v0, %v892_v15 }
 0x894   :  { %v1143_v1 = vsel %vm1121_vm8, %v1139_v52, %v1017_v60  ;;  %v1142_v3 = vsel %vm1121_vm8, %v1138_v56, %v1016_v61 }
 0x895   :  { %v1137_v18 = vpop.xlane.xlu1 %1136  ;;  %v1134_v22 = vpop.xlane.xlu0 %1133 }
 0x896   :  { %v1141_v4 = vadd.f32 %v1137_v18, %v2396_v32  ;;  %v1140_v7 = vadd.f32 %v1134_v22, %v2396_v32 }
 0x898   :  { %v1145_v22 = vsel %vm1121_vm8, %v1141_v4, %v1019_v16  ;;  %v1144_v25 = vsel %vm1121_vm8, %v1140_v7, %v1018_v21 }
 0x899   :  { %v1257_v35 = vpop.xlane.xlu1 %1256  ;;  %v1254_v33 = vpop.xlane.xlu0 %1253 }
 0x89a   :  { %v1265_v59 = vadd.f32 %v1257_v35, %v2396_v32  ;;  %v1264_v62 = vadd.f32 %v1254_v33, %v2396_v32 }
 0x89c   :  { %v1269_v8 = vsel %vm1247_vm9, %v1265_v59, %v1143_v1  ;;  %v1268_v12 = vsel %vm1247_vm9, %v1264_v62, %v1142_v3 }
 0x89d   :  { %v1263_v53 = vpop.xlane.xlu1 %1262  ;;  %v1260_v41 = vpop.xlane.xlu0 %1259 }
 0x89e   :  { %v1267_v9 = vadd.f32 %v1263_v53, %v2396_v32  ;;  %v1266_v13 = vadd.f32 %v1260_v41, %v2396_v32 }
 0x8a0   :  { %v1271_v26 = vsel %vm1247_vm9, %v1267_v9, %v1145_v22  ;;  %v1270_v35 = vsel %vm1247_vm9, %v1266_v13, %v1144_v25 }
 0x8da   :  { %v1383_v2 = vpop.xlane.xlu1 %1382 }
 0x8db   :  { %v1391_v5 = vadd.f32 %v1383_v2, %v2396_v32  ;;  %v1380_v6 = vpop.xlane.xlu0 %1379 }
 0x8dc   :  { %v1390_v10 = vadd.f32 %v1380_v6, %v2396_v32 }
 0x8dd   :  { %v1395_v14 = vsel %vm1373_vm10, %v1391_v5, %v1269_v8 }
 0x8de   :  { %1400 = vst.msk [vmem:[%s2530_s12 + $0x8] sm:$0xff] %vm1398_vm11, %v1395_v14  ;;  %v1394_v18 = vsel %vm1373_vm10, %v1390_v10, %v1268_v12  ;;  %v1389_v19 = vpop.xlane.xlu1 %1388 }
 0x8df   :  { %1399 = vst.msk [vmem:[%s2530_s12] sm:$0xff] %vm1398_vm11, %v1394_v18  ;;  %v1393_v23 = vadd.f32 %v1389_v19, %v2396_v32  ;;  %v1386_v24 = vpop.xlane.xlu0 %1385 }
 0x8e0   :  { %v1392_v27 = vadd.f32 %v1386_v24, %v2396_v32 }
 0x8e1   :  { %v1397_v28 = vsel %vm1373_vm10, %v1393_v23, %v1271_v26 }
 0x8e2   :  { %1402 = vst.msk [vmem:[%s2530_s12 + $0x18] sm:$0xff] %vm1398_vm11, %v1397_v28  ;;  %v1396_v29 = vsel %vm1373_vm10, %v1392_v27, %v1270_v35 }
 0x8e3   :  { %1401 = vst.msk [vmem:[%s2530_s12 + $0x10] sm:$0xff] %vm1398_vm11, %v1396_v29 }
 0x8e4   :  { %1985 = dma.done.wait [#allocation5], 512  }
 0x8e5   :  { %1986 = vsyncadd [#allocation5], 4294966784 }
 0x8e6   :  { %1987 = dma.done.wait [#allocation13], 512  }
 0x8e7   :  { %1988 = vsyncadd [#allocation13], 4294966784 }
 0x8e8   :  { %1437 = vsyncpa [#allocation4], 1 }
 0x8e9   :  { %1438 = vsyncpa [#allocation7], 1 }
 0x8ea   :  { %1439 = vsyncpa [#allocation10], 1 }
 0x8eb   :  { %1440 = vsyncpa [#allocation5], 1 }
 0x8ec   :  { %1441 = vsyncpa [#allocation13], 1 }

</bundles_post_ra>
